<compile_context>
chip_gen: v6e
topology: v6e:2x2x1
jax: 0.10.0
libtpu: 0.0.40
codegen_flags: <defaults>
</compile_context>

<pallas_src>
import jax
import jax.numpy as jnp
from jax.experimental import pallas as pl
from jax.experimental.pallas import tpu as pltpu

# MLP_size = [input_dim] + mlp_size + [1]
DIMS = [128, 128, 128, 64, 16, 1]
N_LAYERS = len(DIMS) - 1
PAD = 128          # lane-dense padded feature width (max(DIMS))
BN_EPS = 1e-5


def alpha_predictor_kernel(x_ref, w_ref, gamma_ref, beta_ref, out_ref):
    """Fused MLP + train-mode BatchNorm + LeakyReLU + (1 + 0.99*tanh).

    x_ref:     (B, 128)        f32
    w_ref:     (5, 128, 128)   f32, each layer's (in,out) weight zero-padded
    gamma_ref: (5, 128)        f32, zero-padded BN gamma per layer
    beta_ref:  (5, 128)        f32, zero-padded BN beta per layer
    out_ref:   (B, 1)          f32
    """
    b = x_ref.shape[0]
    inv_b = 1.0 / float(b)

    h = x_ref[...].astype(jnp.float32)                 # (B, 128)

    for li in range(N_LAYERS):
        w = w_ref[li]                                  # (128, 128) zero-padded
        gamma = gamma_ref[li:li + 1, :]                # (1, 128)   zero-padded
        beta = beta_ref[li:li + 1, :]                  # (1, 128)   zero-padded

        # Dropout(p=0.0) == identity.
        # Linear WITHOUT bias: training-mode BN subtracts the batch mean,
        # which cancels a per-feature constant bias exactly.
        y = jnp.dot(h, w, preferred_element_type=jnp.float32)   # (B, 128)

        # BatchNorm1d (training mode, biased variance), single-pass stats,
        # affine folded into one scale/shift per feature.
        s1 = jnp.sum(y, axis=0, keepdims=True)         # (1, 128)
        s2 = jnp.sum(y * y, axis=0, keepdims=True)     # (1, 128)
        mean = s1 * inv_b
        var = jnp.maximum(s2 * inv_b - mean * mean, 0.0)
        scale = gamma * jax.lax.rsqrt(var + BN_EPS)    # rsqrt -> EUP slot
        shift = beta - mean * scale
        y = y * scale + shift                          # padded lanes stay 0

        # LeakyReLU(0.2) on all but the last block (Identity there).
        if li < N_LAYERS - 1:
            y = jnp.maximum(y, 0.2 * y)
        h = y

    # subdiffusive_only=False: 1.0 + 0.99 * tanh(residual); only lane 0 is real.
    out_ref[...] = (1.0 + 0.99 * jnp.tanh(h[:, 0:1])).astype(out_ref.dtype)


def alpha_predictor(x, w_all, gammas, betas):
    """x: (B, 128) f32; packed params from pack_params()."""
    B = x.shape[0]
    vmem = lambda: pl.BlockSpec(memory_space=pltpu.MemorySpace.VMEM)
    return pl.pallas_call(
        alpha_predictor_kernel,
        # No grid: single invocation, full arrays resident in VMEM, no
        # pipeline machinery / double buffering.
        in_specs=[vmem(), vmem(), vmem(), vmem()],
        out_specs=vmem(),
        out_shape=jax.ShapeDtypeStruct((B, 1), jnp.float32),
    )(x, w_all, gammas, betas)


def init_params(key):
    """PyTorch-style init.

    Linear: U(-1/sqrt(fan_in), 1/sqrt(fan_in)) for weight and bias.
    BatchNorm1d: gamma = 1, beta = 0.
    Weights stored (in_features, out_features) so y = x @ W (+ b).
    """
    params = []
    keys = jax.random.split(key, 2 * N_LAYERS)
    ki = 0
    for i in range(N_LAYERS):
        fan_in, fan_out = DIMS[i], DIMS[i + 1]
        bound = 1.0 / float(fan_in) ** 0.5
        w = jax.random.uniform(keys[ki], (fan_in, fan_out),
                               minval=-bound, maxval=bound, dtype=jnp.float32)
        ki += 1
        b = jax.random.uniform(keys[ki], (1, fan_out),
                               minval=-bound, maxval=bound, dtype=jnp.float32)
        ki += 1
        gamma = jnp.ones((1, fan_out), jnp.float32)
        beta = jnp.zeros((1, fan_out), jnp.float32)
        params.append((w, b, gamma, beta))
    return params


def pack_params(params):
    """Pack per-layer params into 3 lane-dense zero-padded slabs.

    The Linear bias is intentionally dropped: it cancels under training-mode
    BatchNorm's mean subtraction, so the kernel output is unchanged.
    """
    w_all = jnp.zeros((N_LAYERS, PAD, PAD), jnp.float32)
    gammas = jnp.zeros((N_LAYERS, PAD), jnp.float32)
    betas = jnp.zeros((N_LAYERS, PAD), jnp.float32)
    for li, (w, _b, g, bt) in enumerate(params):
        din, dout = w.shape
        w_all = w_all.at[li, :din, :dout].set(w)
        gammas = gammas.at[li, :dout].set(g.reshape(-1))
        betas = betas.at[li, :dout].set(bt.reshape(-1))
    return w_all, gammas, betas


def alpha_predictor_ref(x, params):
    """Pure-JAX reference matching the PyTorch module (incl. bias, 2-pass BN)."""
    h = x
    for li, (w, b, g, bt) in enumerate(params):
        y = h @ w + b
        mean = jnp.mean(y, axis=0, keepdims=True)
        var = jnp.mean((y - mean) ** 2, axis=0, keepdims=True)
        y = (y - mean) / jnp.sqrt(var + BN_EPS) * g + bt
        if li < N_LAYERS - 1:
            y = jnp.where(y > 0, y, 0.2 * y)
        h = y
    return 1.0 + 0.99 * jnp.tanh(h)


if __name__ == "__main__":
    root = jax.random.PRNGKey(0)
    kx, kp = jax.random.split(root)

    B = 8  # small batch; BatchNorm (train mode) needs B >= 2
    x = jax.random.normal(kx, (B, DIMS[0]), dtype=jnp.float32)
    params = init_params(kp)
    w_all, gammas, betas = pack_params(params)

    out = alpha_predictor(x, w_all, gammas, betas)
    jax.block_until_ready(out)

    assert out.shape == (B, 1) and out.dtype == jnp.float32
    assert bool(jnp.all(jnp.isfinite(out)))
    # Output range enforced by 1 + 0.99*tanh.
    assert bool(jnp.all(out > 0.0)) and bool(jnp.all(out < 2.0))

    # Correctness vs. a pure-JAX reference that keeps the bias and two-pass BN:
    # the bias cancellation and single-pass variance only differ at f32
    # rounding level.
    ref = alpha_predictor_ref(x, params)
    max_err = float(jnp.max(jnp.abs(out - ref)))
    assert max_err < 1e-3, f"max abs error {max_err}"

    print("KERNEL_OK")
</pallas_src>

<mosaic_0001>
module attributes {stable_mosaic.version = 11 : i64} {
  func.func @alpha_predictor_kernel(%arg0: memref<8x128xf32, #tpu.memory_space<vmem>>, %arg1: memref<5x128x128xf32, #tpu.memory_space<vmem>>, %arg2: memref<5x128xf32, #tpu.memory_space<vmem>>, %arg3: memref<5x128xf32, #tpu.memory_space<vmem>>, %arg4: memref<8x1xf32, #tpu.memory_space<vmem>>) attributes {dimension_semantics = [], scalar_prefetch = 0 : i64, scratch_operands = 0 : i64, tpu.core_type = #tpu.core_type<tc>} {
    %c0 = arith.constant 0 : index
    %c0_0 = arith.constant 0 : index
    %0 = vector.load %arg0[%c0, %c0_0] : memref<8x128xf32, #tpu.memory_space<vmem>>, vector<8x128xf32>
    %c0_1 = arith.constant 0 : index
    %c0_2 = arith.constant 0 : index
    %c0_3 = arith.constant 0 : index
    %1 = vector.load %arg1[%c0_1, %c0_2, %c0_3] : memref<5x128x128xf32, #tpu.memory_space<vmem>>, vector<1x128x128xf32>
    %2 = vector.shape_cast %1 : vector<1x128x128xf32> to vector<128x128xf32>
    %c0_4 = arith.constant 0 : index
    %c0_5 = arith.constant 0 : index
    %3 = vector.load %arg2[%c0_4, %c0_5] : memref<5x128xf32, #tpu.memory_space<vmem>>, vector<1x128xf32>
    %c0_6 = arith.constant 0 : index
    %c0_7 = arith.constant 0 : index
    %4 = vector.load %arg3[%c0_6, %c0_7] : memref<5x128xf32, #tpu.memory_space<vmem>>, vector<1x128xf32>
    %cst = arith.constant dense<0.000000e+00> : vector<8x128xf32>
    %5 = tpu.matmul %0, %2, %cst {dimension_numbers = #tpu.dot_dimension_numbers<[1], [0], [0], [1], [0, 0, 1, 1], [], []>} : vector<8x128xf32>, vector<128x128xf32>, vector<8x128xf32> -> vector<8x128xf32>
    %cst_8 = arith.constant dense<0.000000e+00> : vector<128xf32>
    %6 = vector.multi_reduction <add>, %5, %cst_8 [0] : vector<8x128xf32> to vector<128xf32>
    %7 = vector.shape_cast %6 : vector<128xf32> to vector<1x128xf32>
    %8 = arith.mulf %5, %5 : vector<8x128xf32>
    %cst_9 = arith.constant dense<0.000000e+00> : vector<128xf32>
    %9 = vector.multi_reduction <add>, %8, %cst_9 [0] : vector<8x128xf32> to vector<128xf32>
    %10 = vector.shape_cast %9 : vector<128xf32> to vector<1x128xf32>
    %cst_10 = arith.constant 1.250000e-01 : f32
    %11 = vector.broadcast %cst_10 : f32 to vector<1x128xf32>
    %12 = arith.mulf %7, %11 : vector<1x128xf32>
    %cst_11 = arith.constant 1.250000e-01 : f32
    %13 = vector.broadcast %cst_11 : f32 to vector<1x128xf32>
    %14 = arith.mulf %10, %13 : vector<1x128xf32>
    %15 = arith.mulf %12, %12 : vector<1x128xf32>
    %16 = arith.subf %14, %15 : vector<1x128xf32>
    %cst_12 = arith.constant 0.000000e+00 : f32
    %17 = vector.broadcast %cst_12 : f32 to vector<1x128xf32>
    %18 = arith.maximumf %16, %17 : vector<1x128xf32>
    %cst_13 = arith.constant 9.99999974E-6 : f32
    %19 = vector.broadcast %cst_13 : f32 to vector<1x128xf32>
    %20 = arith.addf %18, %19 : vector<1x128xf32>
    %21 = math.rsqrt %20 : vector<1x128xf32>
    %22 = arith.mulf %3, %21 : vector<1x128xf32>
    %23 = arith.mulf %12, %22 : vector<1x128xf32>
    %24 = arith.subf %4, %23 : vector<1x128xf32>
    %25 = vector.broadcast %22 : vector<1x128xf32> to vector<8x128xf32>
    %26 = arith.mulf %5, %25 : vector<8x128xf32>
    %27 = vector.broadcast %24 : vector<1x128xf32> to vector<8x128xf32>
    %28 = arith.addf %26, %27 : vector<8x128xf32>
    %cst_14 = arith.constant 2.000000e-01 : f32
    %29 = vector.broadcast %cst_14 : f32 to vector<8x128xf32>
    %30 = arith.mulf %29, %28 : vector<8x128xf32>
    %31 = arith.maximumf %28, %30 : vector<8x128xf32>
    %c1 = arith.constant 1 : index
    %c0_15 = arith.constant 0 : index
    %c0_16 = arith.constant 0 : index
    %32 = vector.load %arg1[%c1, %c0_15, %c0_16] : memref<5x128x128xf32, #tpu.memory_space<vmem>>, vector<1x128x128xf32>
    %33 = vector.shape_cast %32 : vector<1x128x128xf32> to vector<128x128xf32>
    %c1_17 = arith.constant 1 : index
    %c0_18 = arith.constant 0 : index
    %34 = vector.load %arg2[%c1_17, %c0_18] : memref<5x128xf32, #tpu.memory_space<vmem>>, vector<1x128xf32>
    %c1_19 = arith.constant 1 : index
    %c0_20 = arith.constant 0 : index
    %35 = vector.load %arg3[%c1_19, %c0_20] : memref<5x128xf32, #tpu.memory_space<vmem>>, vector<1x128xf32>
    %cst_21 = arith.constant dense<0.000000e+00> : vector<8x128xf32>
    %36 = tpu.matmul %31, %33, %cst_21 {dimension_numbers = #tpu.dot_dimension_numbers<[1], [0], [0], [1], [0, 0, 1, 1], [], []>} : vector<8x128xf32>, vector<128x128xf32>, vector<8x128xf32> -> vector<8x128xf32>
    %cst_22 = arith.constant dense<0.000000e+00> : vector<128xf32>
    %37 = vector.multi_reduction <add>, %36, %cst_22 [0] : vector<8x128xf32> to vector<128xf32>
    %38 = vector.shape_cast %37 : vector<128xf32> to vector<1x128xf32>
    %39 = arith.mulf %36, %36 : vector<8x128xf32>
    %cst_23 = arith.constant dense<0.000000e+00> : vector<128xf32>
    %40 = vector.multi_reduction <add>, %39, %cst_23 [0] : vector<8x128xf32> to vector<128xf32>
    %41 = vector.shape_cast %40 : vector<128xf32> to vector<1x128xf32>
    %cst_24 = arith.constant 1.250000e-01 : f32
    %42 = vector.broadcast %cst_24 : f32 to vector<1x128xf32>
    %43 = arith.mulf %38, %42 : vector<1x128xf32>
    %cst_25 = arith.constant 1.250000e-01 : f32
    %44 = vector.broadcast %cst_25 : f32 to vector<1x128xf32>
    %45 = arith.mulf %41, %44 : vector<1x128xf32>
    %46 = arith.mulf %43, %43 : vector<1x128xf32>
    %47 = arith.subf %45, %46 : vector<1x128xf32>
    %cst_26 = arith.constant 0.000000e+00 : f32
    %48 = vector.broadcast %cst_26 : f32 to vector<1x128xf32>
    %49 = arith.maximumf %47, %48 : vector<1x128xf32>
    %cst_27 = arith.constant 9.99999974E-6 : f32
    %50 = vector.broadcast %cst_27 : f32 to vector<1x128xf32>
    %51 = arith.addf %49, %50 : vector<1x128xf32>
    %52 = math.rsqrt %51 : vector<1x128xf32>
    %53 = arith.mulf %34, %52 : vector<1x128xf32>
    %54 = arith.mulf %43, %53 : vector<1x128xf32>
    %55 = arith.subf %35, %54 : vector<1x128xf32>
    %56 = vector.broadcast %53 : vector<1x128xf32> to vector<8x128xf32>
    %57 = arith.mulf %36, %56 : vector<8x128xf32>
    %58 = vector.broadcast %55 : vector<1x128xf32> to vector<8x128xf32>
    %59 = arith.addf %57, %58 : vector<8x128xf32>
    %cst_28 = arith.constant 2.000000e-01 : f32
    %60 = vector.broadcast %cst_28 : f32 to vector<8x128xf32>
    %61 = arith.mulf %60, %59 : vector<8x128xf32>
    %62 = arith.maximumf %59, %61 : vector<8x128xf32>
    %c2 = arith.constant 2 : index
    %c0_29 = arith.constant 0 : index
    %c0_30 = arith.constant 0 : index
    %63 = vector.load %arg1[%c2, %c0_29, %c0_30] : memref<5x128x128xf32, #tpu.memory_space<vmem>>, vector<1x128x128xf32>
    %64 = vector.shape_cast %63 : vector<1x128x128xf32> to vector<128x128xf32>
    %c2_31 = arith.constant 2 : index
    %c0_32 = arith.constant 0 : index
    %65 = vector.load %arg2[%c2_31, %c0_32] : memref<5x128xf32, #tpu.memory_space<vmem>>, vector<1x128xf32>
    %c2_33 = arith.constant 2 : index
    %c0_34 = arith.constant 0 : index
    %66 = vector.load %arg3[%c2_33, %c0_34] : memref<5x128xf32, #tpu.memory_space<vmem>>, vector<1x128xf32>
    %cst_35 = arith.constant dense<0.000000e+00> : vector<8x128xf32>
    %67 = tpu.matmul %62, %64, %cst_35 {dimension_numbers = #tpu.dot_dimension_numbers<[1], [0], [0], [1], [0, 0, 1, 1], [], []>} : vector<8x128xf32>, vector<128x128xf32>, vector<8x128xf32> -> vector<8x128xf32>
    %cst_36 = arith.constant dense<0.000000e+00> : vector<128xf32>
    %68 = vector.multi_reduction <add>, %67, %cst_36 [0] : vector<8x128xf32> to vector<128xf32>
    %69 = vector.shape_cast %68 : vector<128xf32> to vector<1x128xf32>
    %70 = arith.mulf %67, %67 : vector<8x128xf32>
    %cst_37 = arith.constant dense<0.000000e+00> : vector<128xf32>
    %71 = vector.multi_reduction <add>, %70, %cst_37 [0] : vector<8x128xf32> to vector<128xf32>
    %72 = vector.shape_cast %71 : vector<128xf32> to vector<1x128xf32>
    %cst_38 = arith.constant 1.250000e-01 : f32
    %73 = vector.broadcast %cst_38 : f32 to vector<1x128xf32>
    %74 = arith.mulf %69, %73 : vector<1x128xf32>
    %cst_39 = arith.constant 1.250000e-01 : f32
    %75 = vector.broadcast %cst_39 : f32 to vector<1x128xf32>
    %76 = arith.mulf %72, %75 : vector<1x128xf32>
    %77 = arith.mulf %74, %74 : vector<1x128xf32>
    %78 = arith.subf %76, %77 : vector<1x128xf32>
    %cst_40 = arith.constant 0.000000e+00 : f32
    %79 = vector.broadcast %cst_40 : f32 to vector<1x128xf32>
    %80 = arith.maximumf %78, %79 : vector<1x128xf32>
    %cst_41 = arith.constant 9.99999974E-6 : f32
    %81 = vector.broadcast %cst_41 : f32 to vector<1x128xf32>
    %82 = arith.addf %80, %81 : vector<1x128xf32>
    %83 = math.rsqrt %82 : vector<1x128xf32>
    %84 = arith.mulf %65, %83 : vector<1x128xf32>
    %85 = arith.mulf %74, %84 : vector<1x128xf32>
    %86 = arith.subf %66, %85 : vector<1x128xf32>
    %87 = vector.broadcast %84 : vector<1x128xf32> to vector<8x128xf32>
    %88 = arith.mulf %67, %87 : vector<8x128xf32>
    %89 = vector.broadcast %86 : vector<1x128xf32> to vector<8x128xf32>
    %90 = arith.addf %88, %89 : vector<8x128xf32>
    %cst_42 = arith.constant 2.000000e-01 : f32
    %91 = vector.broadcast %cst_42 : f32 to vector<8x128xf32>
    %92 = arith.mulf %91, %90 : vector<8x128xf32>
    %93 = arith.maximumf %90, %92 : vector<8x128xf32>
    %c3 = arith.constant 3 : index
    %c0_43 = arith.constant 0 : index
    %c0_44 = arith.constant 0 : index
    %94 = vector.load %arg1[%c3, %c0_43, %c0_44] : memref<5x128x128xf32, #tpu.memory_space<vmem>>, vector<1x128x128xf32>
    %95 = vector.shape_cast %94 : vector<1x128x128xf32> to vector<128x128xf32>
    %c3_45 = arith.constant 3 : index
    %c0_46 = arith.constant 0 : index
    %96 = vector.load %arg2[%c3_45, %c0_46] : memref<5x128xf32, #tpu.memory_space<vmem>>, vector<1x128xf32>
    %c3_47 = arith.constant 3 : index
    %c0_48 = arith.constant 0 : index
    %97 = vector.load %arg3[%c3_47, %c0_48] : memref<5x128xf32, #tpu.memory_space<vmem>>, vector<1x128xf32>
    %cst_49 = arith.constant dense<0.000000e+00> : vector<8x128xf32>
    %98 = tpu.matmul %93, %95, %cst_49 {dimension_numbers = #tpu.dot_dimension_numbers<[1], [0], [0], [1], [0, 0, 1, 1], [], []>} : vector<8x128xf32>, vector<128x128xf32>, vector<8x128xf32> -> vector<8x128xf32>
    %cst_50 = arith.constant dense<0.000000e+00> : vector<128xf32>
    %99 = vector.multi_reduction <add>, %98, %cst_50 [0] : vector<8x128xf32> to vector<128xf32>
    %100 = vector.shape_cast %99 : vector<128xf32> to vector<1x128xf32>
    %101 = arith.mulf %98, %98 : vector<8x128xf32>
    %cst_51 = arith.constant dense<0.000000e+00> : vector<128xf32>
    %102 = vector.multi_reduction <add>, %101, %cst_51 [0] : vector<8x128xf32> to vector<128xf32>
    %103 = vector.shape_cast %102 : vector<128xf32> to vector<1x128xf32>
    %cst_52 = arith.constant 1.250000e-01 : f32
    %104 = vector.broadcast %cst_52 : f32 to vector<1x128xf32>
    %105 = arith.mulf %100, %104 : vector<1x128xf32>
    %cst_53 = arith.constant 1.250000e-01 : f32
    %106 = vector.broadcast %cst_53 : f32 to vector<1x128xf32>
    %107 = arith.mulf %103, %106 : vector<1x128xf32>
    %108 = arith.mulf %105, %105 : vector<1x128xf32>
    %109 = arith.subf %107, %108 : vector<1x128xf32>
    %cst_54 = arith.constant 0.000000e+00 : f32
    %110 = vector.broadcast %cst_54 : f32 to vector<1x128xf32>
    %111 = arith.maximumf %109, %110 : vector<1x128xf32>
    %cst_55 = arith.constant 9.99999974E-6 : f32
    %112 = vector.broadcast %cst_55 : f32 to vector<1x128xf32>
    %113 = arith.addf %111, %112 : vector<1x128xf32>
    %114 = math.rsqrt %113 : vector<1x128xf32>
    %115 = arith.mulf %96, %114 : vector<1x128xf32>
    %116 = arith.mulf %105, %115 : vector<1x128xf32>
    %117 = arith.subf %97, %116 : vector<1x128xf32>
    %118 = vector.broadcast %115 : vector<1x128xf32> to vector<8x128xf32>
    %119 = arith.mulf %98, %118 : vector<8x128xf32>
    %120 = vector.broadcast %117 : vector<1x128xf32> to vector<8x128xf32>
    %121 = arith.addf %119, %120 : vector<8x128xf32>
    %cst_56 = arith.constant 2.000000e-01 : f32
    %122 = vector.broadcast %cst_56 : f32 to vector<8x128xf32>
    %123 = arith.mulf %122, %121 : vector<8x128xf32>
    %124 = arith.maximumf %121, %123 : vector<8x128xf32>
    %c4 = arith.constant 4 : index
    %c0_57 = arith.constant 0 : index
    %c0_58 = arith.constant 0 : index
    %125 = vector.load %arg1[%c4, %c0_57, %c0_58] : memref<5x128x128xf32, #tpu.memory_space<vmem>>, vector<1x128x128xf32>
    %126 = vector.shape_cast %125 : vector<1x128x128xf32> to vector<128x128xf32>
    %c4_59 = arith.constant 4 : index
    %c0_60 = arith.constant 0 : index
    %127 = vector.load %arg2[%c4_59, %c0_60] : memref<5x128xf32, #tpu.memory_space<vmem>>, vector<1x128xf32>
    %c4_61 = arith.constant 4 : index
    %c0_62 = arith.constant 0 : index
    %128 = vector.load %arg3[%c4_61, %c0_62] : memref<5x128xf32, #tpu.memory_space<vmem>>, vector<1x128xf32>
    %cst_63 = arith.constant dense<0.000000e+00> : vector<8x128xf32>
    %129 = tpu.matmul %124, %126, %cst_63 {dimension_numbers = #tpu.dot_dimension_numbers<[1], [0], [0], [1], [0, 0, 1, 1], [], []>} : vector<8x128xf32>, vector<128x128xf32>, vector<8x128xf32> -> vector<8x128xf32>
    %cst_64 = arith.constant dense<0.000000e+00> : vector<128xf32>
    %130 = vector.multi_reduction <add>, %129, %cst_64 [0] : vector<8x128xf32> to vector<128xf32>
    %131 = vector.shape_cast %130 : vector<128xf32> to vector<1x128xf32>
    %132 = arith.mulf %129, %129 : vector<8x128xf32>
    %cst_65 = arith.constant dense<0.000000e+00> : vector<128xf32>
    %133 = vector.multi_reduction <add>, %132, %cst_65 [0] : vector<8x128xf32> to vector<128xf32>
    %134 = vector.shape_cast %133 : vector<128xf32> to vector<1x128xf32>
    %cst_66 = arith.constant 1.250000e-01 : f32
    %135 = vector.broadcast %cst_66 : f32 to vector<1x128xf32>
    %136 = arith.mulf %131, %135 : vector<1x128xf32>
    %cst_67 = arith.constant 1.250000e-01 : f32
    %137 = vector.broadcast %cst_67 : f32 to vector<1x128xf32>
    %138 = arith.mulf %134, %137 : vector<1x128xf32>
    %139 = arith.mulf %136, %136 : vector<1x128xf32>
    %140 = arith.subf %138, %139 : vector<1x128xf32>
    %cst_68 = arith.constant 0.000000e+00 : f32
    %141 = vector.broadcast %cst_68 : f32 to vector<1x128xf32>
    %142 = arith.maximumf %140, %141 : vector<1x128xf32>
    %cst_69 = arith.constant 9.99999974E-6 : f32
    %143 = vector.broadcast %cst_69 : f32 to vector<1x128xf32>
    %144 = arith.addf %142, %143 : vector<1x128xf32>
    %145 = math.rsqrt %144 : vector<1x128xf32>
    %146 = arith.mulf %127, %145 : vector<1x128xf32>
    %147 = arith.mulf %136, %146 : vector<1x128xf32>
    %148 = arith.subf %128, %147 : vector<1x128xf32>
    %149 = vector.broadcast %146 : vector<1x128xf32> to vector<8x128xf32>
    %150 = arith.mulf %129, %149 : vector<8x128xf32>
    %151 = vector.broadcast %148 : vector<1x128xf32> to vector<8x128xf32>
    %152 = arith.addf %150, %151 : vector<8x128xf32>
    %153 = vector.extract_strided_slice %152 {offsets = [0, 0], sizes = [8, 1], strides = [1, 1]} : vector<8x128xf32> to vector<8x1xf32>
    %154 = math.tanh %153 : vector<8x1xf32>
    %cst_70 = arith.constant 9.900000e-01 : f32
    %155 = vector.broadcast %cst_70 : f32 to vector<8x1xf32>
    %156 = arith.mulf %155, %154 : vector<8x1xf32>
    %cst_71 = arith.constant 1.000000e+00 : f32
    %157 = vector.broadcast %cst_71 : f32 to vector<8x1xf32>
    %158 = arith.addf %157, %156 : vector<8x1xf32>
    %c0_72 = arith.constant 0 : index
    %c0_73 = arith.constant 0 : index
    %159 = vector.load %arg4[%c0_72, %c0_73] : memref<8x1xf32, #tpu.memory_space<vmem>>, vector<8x1xf32>
    tpu.vector_store %arg4[%c0_72, %c0_73], %158 {strides = array<i32>} : memref<8x1xf32, #tpu.memory_space<vmem>>, vector<8x1xf32>,
    return
  }
}

</mosaic_0001>

<bundles_post_ra>
// kernel: tpu_custom_call.1
= control target key start
LH: loop header
LB: loop body
LE: loop exit
PB: predicated region body
PF: predicated region fallthrough
CT: control target
= control target key end

     0   :  { %9 = vsyncpa [#allocation3], 0  ;;  %s1212_s0 = inlined_call_operand.hbm [shape: f32[8,128], index: 0, kind: input, shape index: {}]   ;;  %s1213_s1 = inlined_call_operand.hbm [shape: f32[5,128,128], index: 1, kind: input, shape index: {}]   ;;  %s1214_s2 = inlined_call_operand.hbm [shape: f32[5,128], index: 2, kind: input, shape index: {}]   ;;  %s1215_s3 = inlined_call_operand.hbm [shape: f32[5,128], index: 3, kind: input, shape index: {}]   ;;  %s1216_s4 = inlined_call_operand.vmem [shape: f32[8,1], index: 4, kind: output, shape index: {}]  }
   0x1   :  { %10 = vsyncpa [#allocation5], 0 }
   0x2   :  { %11 = vsyncpa [#allocation8], 0  ;;  %s1062_s15 = smov [#allocation4]  }
   0x3   :  { %s27_s16 = sshll.u32 %s1062_s15, 4  ;;  %s28_s16 = int_to_ptr.vmem [resolvable:$true] %s27_s16 }
   0x4   :  { %s984_s17 = scalar_lea.vmem %s28_s16, 10240  ;;  %p989_p1 = scmp.lt.s32.totalorder %s28_s16, %s28_s16 }
   0x5   :  { %p985_p0 = scmp.ne.s32.totalorder %s28_s16, %s984_s17  ;;  %p990_p2 = scmp.lt.s32.totalorder %s984_s17, %s984_s17 }
   0x7   :  { %p991_p3 = por %p990_p2, %p989_p1 }
   0x9   :  { %p992_p4 = pnand %p991_p3, %p985_p0 }
   0xb   :  { %995 = shalt.err (!%p992_p4)
}
   0xc   :  { %s1063_s18 = smov 128   ;;  %s1064_s19 = smov 8  }
   0xd   :  { %33 = dma.hbm_to_vmem [thread:$0]  %s1213_s1, 10240, %s28_s16, [#allocation5], %s1063_s18, %s1063_s18, %s1064_s19  }
   0xe   :  { %s1065_s22 = smov [#allocation2]   ;;  %s1066_s24 = smov [#allocation6]  }
   0xf   :  { %s18_s23 = sshll.u32 %s1065_s22, 4  ;;  %s40_s25 = sshll.u32 %s1066_s24, 4  ;;  %s19_s23 = int_to_ptr.vmem [resolvable:$true] %s18_s23  ;;  %s41_s25 = int_to_ptr.vmem [resolvable:$true] %s40_s25 }
  0x10   :  { %s1004_s26 = scalar_lea.vmem %s19_s23, 128  ;;  %p1009_p6 = scmp.lt.s32.totalorder %s19_s23, %s19_s23 }
  0x11   :  { %p1005_p5 = scmp.ne.s32.totalorder %s19_s23, %s1004_s26  ;;  %p1010_p7 = scmp.lt.s32.totalorder %s1004_s26, %s1004_s26 }
  0x13   :  { %p1011_p8 = por %p1010_p7, %p1009_p6 }
  0x15   :  { %p1012_p9 = pnand %p1011_p8, %p1005_p5 }
  0x17   :  { %1015 = shalt.err (!%p1012_p9)
}
  0x18   :  { %21 = dma.hbm_to_vmem [thread:$0]  %s1212_s0, 128, %s19_s23, [#allocation3]  }
  0x19   :  { %s1024_s29 = scalar_lea.vmem %s41_s25, 128  ;;  %p1029_p11 = scmp.lt.s32.totalorder %s41_s25, %s41_s25 }
  0x1a   :  { %p1025_p10 = scmp.ne.s32.totalorder %s41_s25, %s1024_s29  ;;  %p1030_p12 = scmp.lt.s32.totalorder %s1024_s29, %s1024_s29 }
  0x1c   :  { %p1031_p13 = por %p1030_p12, %p1029_p11 }
  0x1e   :  { %p1032_p0 = pnand %p1031_p13, %p1025_p10 }
  0x20   :  { %1035 = shalt.err (!%p1032_p0)
}
  0x21   :  { %43 = dma.hbm_to_vmem [thread:$0]  %s1214_s2, 128, %s41_s25, [#allocation5]  }
  0x22   :  { %s1067_s5 = smov [#allocation7]  }
  0x23   :  { %s50_s6 = sshll.u32 %s1067_s5, 4  ;;  %s51_s6 = int_to_ptr.vmem [resolvable:$true] %s50_s6 }
  0x24   :  { %s1044_s7 = scalar_lea.vmem %s51_s6, 128  ;;  %p1049_p2 = scmp.lt.s32.totalorder %s51_s6, %s51_s6 }
  0x25   :  { %p1045_p1 = scmp.ne.s32.totalorder %s51_s6, %s1044_s7  ;;  %p1050_p3 = scmp.lt.s32.totalorder %s1044_s7, %s1044_s7 }
  0x27   :  { %p1051_p4 = por %p1050_p3, %p1049_p2 }
  0x29   :  { %p1052_p5 = pnand %p1051_p4, %p1045_p1 }
  0x2b   :  { %1055 = shalt.err (!%p1052_p5)
}
  0x2c   :  { %53 = dma.hbm_to_vmem [thread:$0]  %s1215_s3, 128, %s51_s6, [#allocation8]  }
  0x2d   :  { %1056 = dma.done.wait [#allocation3], 128  }
  0x2e   :  { %1057 = vsyncadd [#allocation3], 4294967168 }
  0x2f   :  { %1058 = dma.done.wait [#allocation5], 10368  }
  0x30   :  { %1059 = vsyncadd [#allocation5], 4294956928 }
  0x31   :  { %1060 = dma.done.wait [#allocation8], 128  }
  0x32   :  { %1061 = vsyncadd [#allocation8], 4294967168  ;;  %v1068_v0 = vmov 0.0   ;;  %vm1069_vm0 = vmmov 0   ;;  %v82_v1 = vld [vmem:[#allocation4 + $0x78] sm:$0xff]  ;;  %v81_v2 = vld [vmem:[#allocation4 + $0x70] sm:$0xff]  ;;  %v178_v55 = vlaneseq }
  0x33   :  { %781 = vmatprep.subr.mxu0 %v1068_v0  ;;  %813 = vmatprep.mubr.msk.f32.mxu0 %vm1069_vm0, %v1068_v0  ;;  %v80_v3 = vld [vmem:[#allocation4 + $0x68] sm:$0xff]  ;;  %v79_v4 = vld [vmem:[#allocation4 + $0x60] sm:$0xff]  ;;  %v78_v5 = vld [vmem:[#allocation4 + $0x58] sm:$0xff]  ;;  %vm687_vm1 = vcmask 7168  }
  0x34   :  { %816 = vmatprep.subr.mxu1 %v1068_v0  ;;  %848 = vmatprep.mubr.msk.f32.mxu1 %vm1069_vm0, %v1068_v0  ;;  %v77_v6 = vld [vmem:[#allocation4 + $0x50] sm:$0xff]  ;;  %v76_v7 = vld [vmem:[#allocation4 + $0x48] sm:$0xff]  ;;  %v75_v8 = vld [vmem:[#allocation4 + $0x40] sm:$0xff]  ;;  %v179_v56 = vshrl.u32 %v178_v55, 7 }
  0x35   :  { %782 = vmatpush3.msra.mxu0 %v82_v1  ;;  %v74_v9 = vld [vmem:[#allocation4 + $0x38] sm:$0xff]  ;;  %v73_v10 = vld [vmem:[#allocation4 + $0x30] sm:$0xff]  ;;  %v72_v11 = vld [vmem:[#allocation4 + $0x28] sm:$0xff] }
  0x36   :  { %783 = vmatprep.subr.mxu0 %v1068_v0  ;;  %v71_v12 = vld [vmem:[#allocation4 + $0x20] sm:$0xff]  ;;  %v70_v13 = vld [vmem:[#allocation4 + $0x18] sm:$0xff]  ;;  %v69_v14 = vld [vmem:[#allocation4 + $0x10] sm:$0xff]  ;;  %v1147_v58 = vsub.s32 0, %v179_v56 }
  0x37   :  { %784 = vmatpush3.msra.mxu0 %v81_v2  ;;  %v68_v15 = vld [vmem:[#allocation4 + $0x8] sm:$0xff]  ;;  %v67_v16 = vld [vmem:[#allocation4] sm:$0xff]  ;;  %v66_v17 = vld [vmem:[#allocation2] sm:$0xff] }
  0x38   :  { %785 = vmatprep.subr.mxu0 %v1068_v0  ;;  %v206_v18 = vld [vmem:[#allocation4 + $0xf8] sm:$0xff]  ;;  %v205_v19 = vld [vmem:[#allocation4 + $0xf0] sm:$0xff]  ;;  %v204_v20 = vld [vmem:[#allocation4 + $0xe8] sm:$0xff] }
  0x39   :  { %786 = vmatpush3.msra.mxu0 %v80_v3  ;;  %817 = vmatpush3.msra.mxu1 %v206_v18  ;;  %v203_v21 = vld [vmem:[#allocation4 + $0xe0] sm:$0xff]  ;;  %v202_v22 = vld [vmem:[#allocation4 + $0xd8] sm:$0xff]  ;;  %v201_v23 = vld [vmem:[#allocation4 + $0xd0] sm:$0xff] }
  0x3a   :  { %787 = vmatprep.subr.mxu0 %v1068_v0  ;;  %818 = vmatprep.subr.mxu1 %v1068_v0  ;;  %v200_v24 = vld [vmem:[#allocation4 + $0xc8] sm:$0xff]  ;;  %v199_v25 = vld [vmem:[#allocation4 + $0xc0] sm:$0xff]  ;;  %v198_v26 = vld [vmem:[#allocation4 + $0xb8] sm:$0xff] }
  0x3b   :  { %788 = vmatpush3.msra.mxu0 %v79_v4  ;;  %819 = vmatpush3.msra.mxu1 %v205_v19  ;;  %v197_v27 = vld [vmem:[#allocation4 + $0xb0] sm:$0xff]  ;;  %v196_v28 = vld [vmem:[#allocation4 + $0xa8] sm:$0xff]  ;;  %v195_v29 = vld [vmem:[#allocation4 + $0xa0] sm:$0xff] }
  0x3c   :  { %789 = vmatprep.subr.mxu0 %v1068_v0  ;;  %820 = vmatprep.subr.mxu1 %v1068_v0  ;;  %v194_v30 = vld [vmem:[#allocation4 + $0x98] sm:$0xff]  ;;  %v193_v31 = vld [vmem:[#allocation4 + $0x90] sm:$0xff]  ;;  %v192_v32 = vld [vmem:[#allocation4 + $0x88] sm:$0xff] }
  0x3d   :  { %790 = vmatpush3.msra.mxu0 %v78_v5  ;;  %821 = vmatpush3.msra.mxu1 %v204_v20  ;;  %v191_v33 = vld [vmem:[#allocation4 + $0x80] sm:$0xff]  ;;  %v84_v61 = vld [vmem:[#allocation7] sm:$0x1]  ;;  %v318_v19 = vld [vmem:[#allocation4 + $0x118] sm:$0xff] }
  0x3e   :  { %791 = vmatprep.subr.mxu0 %v1068_v0  ;;  %822 = vmatprep.subr.mxu1 %v1068_v0  ;;  %v83_v57 = vld [vmem:[#allocation6] sm:$0x1]  ;;  %v317_v20 = vld [vmem:[#allocation4 + $0x110] sm:$0xff]  ;;  %v454_v56 = vld [vmem:[#allocation4 + $0x1f8] sm:$0xff] }
  0x3f   :  { %792 = vmatpush3.msra.mxu0 %v77_v6  ;;  %823 = vmatpush3.msra.mxu1 %v203_v21  ;;  %v319_v18 = vld [vmem:[#allocation4 + $0x120] sm:$0xff]  ;;  %v316_v21 = vld [vmem:[#allocation4 + $0x108] sm:$0xff] }
  0x40   :  { %793 = vmatprep.subr.mxu0 %v1068_v0  ;;  %824 = vmatprep.subr.mxu1 %v1068_v0 }
  0x41   :  { %794 = vmatpush3.msra.mxu0 %v76_v7  ;;  %825 = vmatpush3.msra.mxu1 %v202_v22  ;;  %v330_v7 = vld [vmem:[#allocation4 + $0x178] sm:$0xff]  ;;  %v315_v22 = vld [vmem:[#allocation4 + $0x100] sm:$0xff] }
  0x42   :  { %795 = vmatprep.subr.mxu0 %v1068_v0  ;;  %826 = vmatprep.subr.mxu1 %v1068_v0 }
  0x43   :  { %796 = vmatpush3.msra.mxu0 %v75_v8  ;;  %827 = vmatpush3.msra.mxu1 %v201_v23  ;;  %v329_v8 = vld [vmem:[#allocation4 + $0x170] sm:$0xff] }
  0x44   :  { %797 = vmatprep.subr.mxu0 %v1068_v0  ;;  %828 = vmatprep.subr.mxu1 %v1068_v0 }
  0x45   :  { %798 = vmatpush3.msra.mxu0 %v74_v9  ;;  %829 = vmatpush3.msra.mxu1 %v200_v24  ;;  %v328_v9 = vld [vmem:[#allocation4 + $0x168] sm:$0xff] }
  0x46   :  { %799 = vmatprep.subr.mxu0 %v1068_v0  ;;  %830 = vmatprep.subr.mxu1 %v1068_v0 }
  0x47   :  { %800 = vmatpush3.msra.mxu0 %v73_v10  ;;  %831 = vmatpush3.msra.mxu1 %v199_v25  ;;  %v327_v10 = vld [vmem:[#allocation4 + $0x160] sm:$0xff] }
  0x48   :  { %801 = vmatprep.subr.mxu0 %v1068_v0  ;;  %832 = vmatprep.subr.mxu1 %v1068_v0 }
  0x49   :  { %802 = vmatpush3.msra.mxu0 %v72_v11  ;;  %833 = vmatpush3.msra.mxu1 %v198_v26  ;;  %v326_v11 = vld [vmem:[#allocation4 + $0x158] sm:$0xff] }
  0x4a   :  { %803 = vmatprep.subr.mxu0 %v1068_v0  ;;  %834 = vmatprep.subr.mxu1 %v1068_v0 }
  0x4b   :  { %804 = vmatpush3.msra.mxu0 %v71_v12  ;;  %835 = vmatpush3.msra.mxu1 %v197_v27  ;;  %v325_v12 = vld [vmem:[#allocation4 + $0x150] sm:$0xff] }
  0x4c   :  { %805 = vmatprep.subr.mxu0 %v1068_v0  ;;  %836 = vmatprep.subr.mxu1 %v1068_v0 }
  0x4d   :  { %806 = vmatpush3.msra.mxu0 %v70_v13  ;;  %837 = vmatpush3.msra.mxu1 %v196_v28  ;;  %v324_v13 = vld [vmem:[#allocation4 + $0x148] sm:$0xff] }
  0x4e   :  { %807 = vmatprep.subr.mxu0 %v1068_v0  ;;  %838 = vmatprep.subr.mxu1 %v1068_v0 }
  0x4f   :  { %808 = vmatpush3.msra.mxu0 %v69_v14  ;;  %839 = vmatpush3.msra.mxu1 %v195_v29  ;;  %v323_v14 = vld [vmem:[#allocation4 + $0x140] sm:$0xff] }
  0x50   :  { %809 = vmatprep.subr.mxu0 %v1068_v0  ;;  %840 = vmatprep.subr.mxu1 %v1068_v0 }
  0x51   :  { %810 = vmatpush3.msra.mxu0 %v68_v15  ;;  %841 = vmatpush3.msra.mxu1 %v194_v30  ;;  %v322_v15 = vld [vmem:[#allocation4 + $0x138] sm:$0xff] }
  0x52   :  { %811 = vmatprep.subr.mxu0 %v1068_v0  ;;  %842 = vmatprep.subr.mxu1 %v1068_v0 }
  0x53   :  { %812 = vmatpush3.msra.mxu0 %v67_v16  ;;  %843 = vmatpush3.msra.mxu1 %v193_v31  ;;  %v321_v16 = vld [vmem:[#allocation4 + $0x130] sm:$0xff] }
  0x54   :  { %814 = vmatmul.mubr.f32.vlgmr.msra.gmra.mxu0 %v66_v17  ;;  %851 = vmatprep.subr.mxu0 %v1068_v0  ;;  %v320_v17 = vld [vmem:[#allocation4 + $0x128] sm:$0xff] }
  0x55   :  { %883 = vmatprep.mubr.msk.f32.mxu0 %vm1069_vm0, %v1068_v0  ;;  %844 = vmatprep.subr.mxu1 %v1068_v0 }
  0x56   :  { %845 = vmatpush3.msra.mxu1 %v192_v32  ;;  %852 = vmatpush3.msra.mxu0 %v330_v7  ;;  %v441_v7 = vld [vmem:[#allocation4 + $0x190] sm:$0xff] }
  0x57   :  { %846 = vmatprep.subr.mxu1 %v1068_v0  ;;  %853 = vmatprep.subr.mxu0 %v1068_v0 }
  0x58   :  { %847 = vmatpush3.msra.mxu1 %v191_v33  ;;  %854 = vmatpush3.msra.mxu0 %v329_v8  ;;  %v440_v8 = vld [vmem:[#allocation4 + $0x188] sm:$0xff] }
  0x59   :  { %886 = vmatprep.subr.mxu1 %v1068_v0  ;;  %855 = vmatprep.subr.mxu0 %v1068_v0 }
  0x5a   :  { %856 = vmatpush3.msra.mxu0 %v328_v9  ;;  %v439_v9 = vld [vmem:[#allocation4 + $0x180] sm:$0xff] }
  0x5b   :  { %857 = vmatprep.subr.mxu0 %v1068_v0 }
  0x5c   :  { %858 = vmatpush3.msra.mxu0 %v327_v10 }
  0x5d   :  { %859 = vmatprep.subr.mxu0 %v1068_v0 }
  0x5e   :  { %860 = vmatpush3.msra.mxu0 %v326_v11 }
  0x5f   :  { %861 = vmatprep.subr.mxu0 %v1068_v0 }
  0x60   :  { %862 = vmatpush3.msra.mxu0 %v325_v12 }
  0x61   :  { %863 = vmatprep.subr.mxu0 %v1068_v0 }
  0x62   :  { %864 = vmatpush3.msra.mxu0 %v324_v13 }
  0x63   :  { %865 = vmatprep.subr.mxu0 %v1068_v0 }
  0x64   :  { %866 = vmatpush3.msra.mxu0 %v323_v14 }
  0x65   :  { %867 = vmatprep.subr.mxu0 %v1068_v0 }
  0x66   :  { %868 = vmatpush3.msra.mxu0 %v322_v15 }
  0x67   :  { %869 = vmatprep.subr.mxu0 %v1068_v0 }
  0x68   :  { %870 = vmatpush3.msra.mxu0 %v321_v16 }
  0x69   :  { %871 = vmatprep.subr.mxu0 %v1068_v0 }
  0x6a   :  { %872 = vmatpush3.msra.mxu0 %v320_v17 }
  0x6b   :  { %873 = vmatprep.subr.mxu0 %v1068_v0 }
  0x6c   :  { %874 = vmatpush3.msra.mxu0 %v319_v18 }
  0x6d   :  { %875 = vmatprep.subr.mxu0 %v1068_v0 }
  0x6e   :  { %876 = vmatpush3.msra.mxu0 %v318_v19 }
  0x6f   :  { %877 = vmatprep.subr.mxu0 %v1068_v0 }
  0x70   :  { %878 = vmatpush3.msra.mxu0 %v317_v20 }
  0x71   :  { %879 = vmatprep.subr.mxu0 %v1068_v0 }
  0x72   :  { %880 = vmatpush3.msra.mxu0 %v316_v21 }
  0x73   :  { %881 = vmatprep.subr.mxu0 %v1068_v0 }
  0x74   :  { %882 = vmatpush3.msra.mxu0 %v315_v22 }
  0x75   :  { %921 = vmatprep.subr.mxu0 %v1068_v0 }
 0x114   :  { %v151_v34 = vpop.f32.mrf.mxu0 }
 0x115   :  { %v155_v35 = vrot.slane %v151_v34, 4  ;;  %v161_v36 = vmul.f32 %v151_v34, %v151_v34 }
 0x116   :  { %v815_v37 = vpop.f32.mrf.mxu0 }
 0x117   :  { %v156_v38 = vadd.f32 %v155_v35, %v151_v34  ;;  %v162_v39 = vrot.slane %v161_v36, 4 }
 0x119   :  { %v157_v40 = vrot.slane %v156_v38, 2  ;;  %v163_v41 = vadd.f32 %v162_v39, %v161_v36 }
 0x11b   :  { %v158_v42 = vadd.f32 %v157_v40, %v156_v38  ;;  %v164_v43 = vrot.slane %v163_v41, 2 }
 0x11d   :  { %v159_v44 = vrot.slane %v158_v42, 1  ;;  %v165_v45 = vadd.f32 %v164_v43, %v163_v41 }
 0x11f   :  { %v160_v46 = vadd.f32 %v159_v44, %v158_v42  ;;  %v166_v47 = vrot.slane %v165_v45, 1  ;;  %v207_v44 = vld [vmem:[#allocation6 + $0x1] sm:$0x1] }
 0x121   :  { %v167_v48 = vadd.f32 %v166_v47, %v165_v45  ;;  %v168_v49 = vmul.f32 0.125, %v160_v46  ;;  %v208_v47 = vld [vmem:[#allocation7 + $0x1] sm:$0x1] }
 0x123   :  { %v169_v50 = vmul.f32 0.125, %v167_v48  ;;  %v170_v51 = vmul.f32 %v168_v49, %v168_v49 }
 0x125   :  { %v171_v52 = vsub.f32 %v169_v50, %v170_v51 }
 0x127   :  { %v172_v53 = vmax.f32 %v171_v52, 0.0 }
 0x129   :  { %v173_v54 = vadd.f32 1e-05, %v172_v53 }
 0x12b   :  { %964 = vrsqrt.f32 %v173_v54 }
 0x138   :  { %v965_v59 = vpop.eup %964 }
 0x139   :  { %v175_v60 = vmul.f32 %v965_v59, %v83_v57  ;;  %v453_v57 = vld [vmem:[#allocation4 + $0x1f0] sm:$0xff]  ;;  %v452_v59 = vld [vmem:[#allocation4 + $0x1e8] sm:$0xff] }
 0x13b   :  { %v176_v62 = vmul.f32 %v175_v60, %v168_v49  ;;  %v181_v63 = vrot.slane %v175_v60, %v1147_v58  ;;  %v451_v60 = vld [vmem:[#allocation4 + $0x1e0] sm:$0xff] }
 0x13d   :  { %v177_v1 = vsub.f32 %v84_v61, %v176_v62  ;;  %v182_v2 = vmul.f32 %v181_v63, %v151_v34  ;;  %v450_v61 = vld [vmem:[#allocation4 + $0x1d8] sm:$0xff]  ;;  %v449_v62 = vld [vmem:[#allocation4 + $0x1d0] sm:$0xff]  ;;  %v448_v63 = vld [vmem:[#allocation4 + $0x1c8] sm:$0xff] }
 0x13f   :  { %v186_v3 = vrot.slane %v177_v1, %v1147_v58  ;;  %v447_v1 = vld [vmem:[#allocation4 + $0x1c0] sm:$0xff] }
 0x141   :  { %v187_v4 = vadd.f32 %v186_v3, %v182_v2  ;;  %v446_v2 = vld [vmem:[#allocation4 + $0x1b8] sm:$0xff]  ;;  %v445_v3 = vld [vmem:[#allocation4 + $0x1b0] sm:$0xff] }
 0x143   :  { %v188_v5 = vmul.f32 0.2, %v187_v4 }
 0x145   :  { %v189_v6 = vmax.f32 %v187_v4, %v188_v5  ;;  %v444_v4 = vld [vmem:[#allocation4 + $0x1a8] sm:$0xff]  ;;  %v443_v5 = vld [vmem:[#allocation4 + $0x1a0] sm:$0xff] }
 0x147   :  { %849 = vmatmul.mubr.f32.vlgmr.msra.gmra.mxu1 %v189_v6  ;;  %v442_v6 = vld [vmem:[#allocation4 + $0x198] sm:$0xff] }
 0x148   :  { %918 = vmatprep.mubr.msk.f32.mxu1 %vm1069_vm0, %v1068_v0  ;;  %887 = vmatpush3.msra.mxu1 %v454_v56  ;;  %v565_v56 = vld [vmem:[#allocation4 + $0x210] sm:$0xff] }
 0x149   :  { %888 = vmatprep.subr.mxu1 %v1068_v0 }
 0x14a   :  { %889 = vmatpush3.msra.mxu1 %v453_v57  ;;  %v564_v57 = vld [vmem:[#allocation4 + $0x208] sm:$0xff] }
 0x14b   :  { %890 = vmatprep.subr.mxu1 %v1068_v0 }
 0x14c   :  { %891 = vmatpush3.msra.mxu1 %v452_v59  ;;  %v563_v59 = vld [vmem:[#allocation4 + $0x200] sm:$0xff] }
 0x14d   :  { %892 = vmatprep.subr.mxu1 %v1068_v0 }
 0x14e   :  { %893 = vmatpush3.msra.mxu1 %v451_v60 }
 0x14f   :  { %894 = vmatprep.subr.mxu1 %v1068_v0 }
 0x150   :  { %895 = vmatpush3.msra.mxu1 %v450_v61 }
 0x151   :  { %896 = vmatprep.subr.mxu1 %v1068_v0 }
 0x152   :  { %897 = vmatpush3.msra.mxu1 %v449_v62 }
 0x153   :  { %898 = vmatprep.subr.mxu1 %v1068_v0 }
 0x154   :  { %899 = vmatpush3.msra.mxu1 %v448_v63 }
 0x155   :  { %900 = vmatprep.subr.mxu1 %v1068_v0 }
 0x156   :  { %901 = vmatpush3.msra.mxu1 %v447_v1 }
 0x157   :  { %902 = vmatprep.subr.mxu1 %v1068_v0 }
 0x158   :  { %903 = vmatpush3.msra.mxu1 %v446_v2 }
 0x159   :  { %904 = vmatprep.subr.mxu1 %v1068_v0 }
 0x15a   :  { %905 = vmatpush3.msra.mxu1 %v445_v3 }
 0x15b   :  { %906 = vmatprep.subr.mxu1 %v1068_v0 }
 0x15c   :  { %907 = vmatpush3.msra.mxu1 %v444_v4 }
 0x15d   :  { %908 = vmatprep.subr.mxu1 %v1068_v0 }
 0x15e   :  { %909 = vmatpush3.msra.mxu1 %v443_v5 }
 0x15f   :  { %910 = vmatprep.subr.mxu1 %v1068_v0 }
 0x160   :  { %911 = vmatpush3.msra.mxu1 %v442_v6 }
 0x161   :  { %912 = vmatprep.subr.mxu1 %v1068_v0 }
 0x162   :  { %913 = vmatpush3.msra.mxu1 %v441_v7 }
 0x163   :  { %914 = vmatprep.subr.mxu1 %v1068_v0 }
 0x164   :  { %915 = vmatpush3.msra.mxu1 %v440_v8 }
 0x165   :  { %916 = vmatprep.subr.mxu1 %v1068_v0 }
 0x166   :  { %917 = vmatpush3.msra.mxu1 %v439_v9 }
 0x207   :  { %v275_v23 = vpop.f32.mrf.mxu1 }
 0x208   :  { %v279_v24 = vrot.slane %v275_v23, 4  ;;  %v285_v25 = vmul.f32 %v275_v23, %v275_v23 }
 0x209   :  { %v850_v26 = vpop.f32.mrf.mxu1 }
 0x20a   :  { %v280_v27 = vadd.f32 %v279_v24, %v275_v23  ;;  %v286_v28 = vrot.slane %v285_v25, 4 }
 0x20c   :  { %v281_v29 = vrot.slane %v280_v27, 2  ;;  %v287_v30 = vadd.f32 %v286_v28, %v285_v25 }
 0x20e   :  { %v282_v31 = vadd.f32 %v281_v29, %v280_v27  ;;  %v288_v32 = vrot.slane %v287_v30, 2 }
 0x210   :  { %v283_v33 = vrot.slane %v282_v31, 1  ;;  %v289_v34 = vadd.f32 %v288_v32, %v287_v30 }
 0x212   :  { %v284_v35 = vadd.f32 %v283_v33, %v282_v31  ;;  %v290_v36 = vrot.slane %v289_v34, 1  ;;  %v331_v31 = vld [vmem:[#allocation6 + $0x2] sm:$0x1] }
 0x214   :  { %v291_v37 = vadd.f32 %v290_v36, %v289_v34  ;;  %v292_v38 = vmul.f32 0.125, %v284_v35  ;;  %v332_v34 = vld [vmem:[#allocation7 + $0x2] sm:$0x1] }
 0x216   :  { %v293_v39 = vmul.f32 0.125, %v291_v37  ;;  %v294_v40 = vmul.f32 %v292_v38, %v292_v38 }
 0x218   :  { %v295_v41 = vsub.f32 %v293_v39, %v294_v40 }
 0x21a   :  { %v296_v42 = vmax.f32 %v295_v41, 0.0 }
 0x21c   :  { %v297_v43 = vadd.f32 1e-05, %v296_v42 }
 0x21e   :  { %966 = vrsqrt.f32 %v297_v43  ;;  %v578_v43 = vld [vmem:[#allocation4 + $0x278] sm:$0xff] }
 0x22b   :  { %v967_v45 = vpop.eup %966 }
 0x22c   :  { %v299_v46 = vmul.f32 %v967_v45, %v207_v44  ;;  %v577_v44 = vld [vmem:[#allocation4 + $0x270] sm:$0xff]  ;;  %v576_v45 = vld [vmem:[#allocation4 + $0x268] sm:$0xff] }
 0x22e   :  { %v300_v48 = vmul.f32 %v299_v46, %v292_v38  ;;  %v305_v49 = vrot.slane %v299_v46, %v1147_v58  ;;  %v575_v46 = vld [vmem:[#allocation4 + $0x260] sm:$0xff] }
 0x230   :  { %v301_v50 = vsub.f32 %v208_v47, %v300_v48  ;;  %v306_v51 = vmul.f32 %v305_v49, %v275_v23  ;;  %v574_v47 = vld [vmem:[#allocation4 + $0x258] sm:$0xff]  ;;  %v573_v48 = vld [vmem:[#allocation4 + $0x250] sm:$0xff]  ;;  %v572_v49 = vld [vmem:[#allocation4 + $0x248] sm:$0xff] }
 0x232   :  { %v310_v52 = vrot.slane %v301_v50, %v1147_v58  ;;  %v571_v50 = vld [vmem:[#allocation4 + $0x240] sm:$0xff] }
 0x234   :  { %v311_v53 = vadd.f32 %v310_v52, %v306_v51  ;;  %v570_v51 = vld [vmem:[#allocation4 + $0x238] sm:$0xff]  ;;  %v569_v52 = vld [vmem:[#allocation4 + $0x230] sm:$0xff] }
 0x236   :  { %v312_v54 = vmul.f32 0.2, %v311_v53 }
 0x238   :  { %v313_v55 = vmax.f32 %v311_v53, %v312_v54  ;;  %v568_v53 = vld [vmem:[#allocation4 + $0x228] sm:$0xff]  ;;  %v567_v54 = vld [vmem:[#allocation4 + $0x220] sm:$0xff] }
 0x23a   :  { %884 = vmatmul.mubr.f32.vlgmr.msra.gmra.mxu0 %v313_v55  ;;  %v566_v55 = vld [vmem:[#allocation4 + $0x218] sm:$0xff] }
 0x23b   :  { %953 = vmatprep.mubr.msk.f32.mxu0 %vm1069_vm0, %v1068_v0  ;;  %922 = vmatpush3.msra.mxu0 %v578_v43 }
 0x23c   :  { %923 = vmatprep.subr.mxu0 %v1068_v0 }
 0x23d   :  { %924 = vmatpush3.msra.mxu0 %v577_v44 }
 0x23e   :  { %925 = vmatprep.subr.mxu0 %v1068_v0 }
 0x23f   :  { %926 = vmatpush3.msra.mxu0 %v576_v45 }
 0x240   :  { %927 = vmatprep.subr.mxu0 %v1068_v0 }
 0x241   :  { %928 = vmatpush3.msra.mxu0 %v575_v46 }
 0x242   :  { %929 = vmatprep.subr.mxu0 %v1068_v0 }
 0x243   :  { %930 = vmatpush3.msra.mxu0 %v574_v47 }
 0x244   :  { %931 = vmatprep.subr.mxu0 %v1068_v0 }
 0x245   :  { %932 = vmatpush3.msra.mxu0 %v573_v48 }
 0x246   :  { %933 = vmatprep.subr.mxu0 %v1068_v0 }
 0x247   :  { %934 = vmatpush3.msra.mxu0 %v572_v49 }
 0x248   :  { %935 = vmatprep.subr.mxu0 %v1068_v0 }
 0x249   :  { %936 = vmatpush3.msra.mxu0 %v571_v50  ;;  %v579_v50 = vld [vmem:[#allocation6 + $0x4] sm:$0x1] }
 0x24a   :  { %937 = vmatprep.subr.mxu0 %v1068_v0 }
 0x24b   :  { %938 = vmatpush3.msra.mxu0 %v570_v51 }
 0x24c   :  { %939 = vmatprep.subr.mxu0 %v1068_v0 }
 0x24d   :  { %940 = vmatpush3.msra.mxu0 %v569_v52 }
 0x24e   :  { %941 = vmatprep.subr.mxu0 %v1068_v0 }
 0x24f   :  { %942 = vmatpush3.msra.mxu0 %v568_v53  ;;  %v580_v53 = vld [vmem:[#allocation7 + $0x4] sm:$0x1] }
 0x250   :  { %943 = vmatprep.subr.mxu0 %v1068_v0 }
 0x251   :  { %944 = vmatpush3.msra.mxu0 %v567_v54 }
 0x252   :  { %945 = vmatprep.subr.mxu0 %v1068_v0 }
 0x253   :  { %946 = vmatpush3.msra.mxu0 %v566_v55 }
 0x254   :  { %947 = vmatprep.subr.mxu0 %v1068_v0 }
 0x255   :  { %948 = vmatpush3.msra.mxu0 %v565_v56 }
 0x256   :  { %949 = vmatprep.subr.mxu0 %v1068_v0 }
 0x257   :  { %950 = vmatpush3.msra.mxu0 %v564_v57 }
 0x258   :  { %951 = vmatprep.subr.mxu0 %v1068_v0 }
 0x259   :  { %952 = vmatpush3.msra.mxu0 %v563_v59 }
 0x2fa   :  { %v399_v10 = vpop.f32.mrf.mxu0 }
 0x2fb   :  { %v403_v11 = vrot.slane %v399_v10, 4  ;;  %v409_v12 = vmul.f32 %v399_v10, %v399_v10 }
 0x2fc   :  { %v885_v13 = vpop.f32.mrf.mxu0 }
 0x2fd   :  { %v404_v14 = vadd.f32 %v403_v11, %v399_v10  ;;  %v410_v15 = vrot.slane %v409_v12, 4 }
 0x2ff   :  { %v405_v16 = vrot.slane %v404_v14, 2  ;;  %v411_v17 = vadd.f32 %v410_v15, %v409_v12 }
 0x301   :  { %v406_v18 = vadd.f32 %v405_v16, %v404_v14  ;;  %v412_v19 = vrot.slane %v411_v17, 2 }
 0x303   :  { %v407_v20 = vrot.slane %v406_v18, 1  ;;  %v413_v21 = vadd.f32 %v412_v19, %v411_v17  ;;  %v455_v17 = vld [vmem:[#allocation6 + $0x3] sm:$0x1] }
 0x305   :  { %v408_v22 = vadd.f32 %v407_v20, %v406_v18  ;;  %v414_v23 = vrot.slane %v413_v21, 1  ;;  %v456_v20 = vld [vmem:[#allocation7 + $0x3] sm:$0x1] }
 0x307   :  { %v415_v24 = vadd.f32 %v414_v23, %v413_v21  ;;  %v416_v25 = vmul.f32 0.125, %v408_v22 }
 0x309   :  { %v417_v26 = vmul.f32 0.125, %v415_v24  ;;  %v418_v27 = vmul.f32 %v416_v25, %v416_v25 }
 0x30b   :  { %v419_v28 = vsub.f32 %v417_v26, %v418_v27 }
 0x30d   :  { %v420_v29 = vmax.f32 %v419_v28, 0.0 }
 0x30f   :  { %v421_v30 = vadd.f32 1e-05, %v420_v29 }
 0x311   :  { %968 = vrsqrt.f32 %v421_v30 }
 0x31e   :  { %v969_v32 = vpop.eup %968 }
 0x31f   :  { %v423_v33 = vmul.f32 %v969_v32, %v331_v31 }
 0x321   :  { %v424_v35 = vmul.f32 %v423_v33, %v416_v25  ;;  %v429_v36 = vrot.slane %v423_v33, %v1147_v58 }
 0x323   :  { %v425_v37 = vsub.f32 %v332_v34, %v424_v35  ;;  %v430_v38 = vmul.f32 %v429_v36, %v399_v10 }
 0x325   :  { %v434_v39 = vrot.slane %v425_v37, %v1147_v58 }
 0x327   :  { %v435_v40 = vadd.f32 %v434_v39, %v430_v38 }
 0x329   :  { %v436_v41 = vmul.f32 0.2, %v435_v40 }
 0x32b   :  { %v437_v42 = vmax.f32 %v435_v40, %v436_v41 }
 0x32d   :  { %919 = vmatmul.mubr.f32.vlgmr.msra.gmra.mxu1 %v437_v42 }
 0x3ed   :  { %v523_v60 = vpop.f32.mrf.mxu1 }
 0x3ee   :  { %v527_v61 = vrot.slane %v523_v60, 4  ;;  %v533_v62 = vmul.f32 %v523_v60, %v523_v60 }
 0x3ef   :  { %v920_v63 = vpop.f32.mrf.mxu1 }
 0x3f0   :  { %v528_v1 = vadd.f32 %v527_v61, %v523_v60  ;;  %v534_v2 = vrot.slane %v533_v62, 4 }
 0x3f2   :  { %v529_v3 = vrot.slane %v528_v1, 2  ;;  %v535_v4 = vadd.f32 %v534_v2, %v533_v62 }
 0x3f4   :  { %v530_v5 = vadd.f32 %v529_v3, %v528_v1  ;;  %v536_v6 = vrot.slane %v535_v4, 2 }
 0x3f6   :  { %v531_v7 = vrot.slane %v530_v5, 1  ;;  %v537_v8 = vadd.f32 %v536_v6, %v535_v4 }
 0x3f8   :  { %v532_v9 = vadd.f32 %v531_v7, %v530_v5  ;;  %v538_v10 = vrot.slane %v537_v8, 1 }
 0x3fa   :  { %v539_v11 = vadd.f32 %v538_v10, %v537_v8  ;;  %v540_v12 = vmul.f32 0.125, %v532_v9 }
 0x3fc   :  { %v541_v13 = vmul.f32 0.125, %v539_v11  ;;  %v542_v14 = vmul.f32 %v540_v12, %v540_v12 }
 0x3fe   :  { %v543_v0 = vsub.f32 %v541_v13, %v542_v14 }
 0x400   :  { %v544_v15 = vmax.f32 %v543_v0, 0.0 }
 0x402   :  { %v545_v16 = vadd.f32 1e-05, %v544_v15 }
 0x404   :  { %970 = vrsqrt.f32 %v545_v16 }
 0x411   :  { %v971_v18 = vpop.eup %970 }
 0x412   :  { %v547_v19 = vmul.f32 %v971_v18, %v455_v17 }
 0x414   :  { %v548_v21 = vmul.f32 %v547_v19, %v540_v12  ;;  %v553_v22 = vrot.slane %v547_v19, %v1147_v58 }
 0x416   :  { %v549_v23 = vsub.f32 %v456_v20, %v548_v21  ;;  %v554_v24 = vmul.f32 %v553_v22, %v523_v60 }
 0x418   :  { %v558_v25 = vrot.slane %v549_v23, %v1147_v58 }
 0x41a   :  { %v559_v26 = vadd.f32 %v558_v25, %v554_v24 }
 0x41c   :  { %v560_v27 = vmul.f32 0.2, %v559_v26 }
 0x41e   :  { %v561_v28 = vmax.f32 %v559_v26, %v560_v27 }
 0x420   :  { %954 = vmatmul.mubr.f32.vlgmr.msra.gmra.mxu0 %v561_v28 }
 0x4e0   :  { %v647_v29 = vpop.f32.mrf.mxu0 }
 0x4e1   :  { %v651_v30 = vrot.slane %v647_v29, 4  ;;  %v657_v31 = vmul.f32 %v647_v29, %v647_v29 }
 0x4e2   :  { %v955_v32 = vpop.f32.mrf.mxu0 }
 0x4e3   :  { %v652_v33 = vadd.f32 %v651_v30, %v647_v29  ;;  %v658_v34 = vrot.slane %v657_v31, 4 }
 0x4e5   :  { %v653_v35 = vrot.slane %v652_v33, 2  ;;  %v659_v36 = vadd.f32 %v658_v34, %v657_v31 }
 0x4e7   :  { %v654_v37 = vadd.f32 %v653_v35, %v652_v33  ;;  %v660_v38 = vrot.slane %v659_v36, 2 }
 0x4e9   :  { %v655_v39 = vrot.slane %v654_v37, 1  ;;  %v661_v40 = vadd.f32 %v660_v38, %v659_v36 }
 0x4eb   :  { %v656_v41 = vadd.f32 %v655_v39, %v654_v37  ;;  %v662_v42 = vrot.slane %v661_v40, 1 }
 0x4ed   :  { %v663_v43 = vadd.f32 %v662_v42, %v661_v40  ;;  %v664_v44 = vmul.f32 0.125, %v656_v41 }
 0x4ef   :  { %v665_v45 = vmul.f32 0.125, %v663_v43  ;;  %v666_v46 = vmul.f32 %v664_v44, %v664_v44 }
 0x4f1   :  { %v667_v47 = vsub.f32 %v665_v45, %v666_v46 }
 0x4f3   :  { %v668_v48 = vmax.f32 %v667_v47, 0.0 }
 0x4f5   :  { %v669_v49 = vadd.f32 1e-05, %v668_v48 }
 0x4f7   :  { %972 = vrsqrt.f32 %v669_v49 }
 0x504   :  { %v973_v51 = vpop.eup %972 }
 0x505   :  { %v671_v52 = vmul.f32 %v973_v51, %v579_v50 }
 0x507   :  { %v672_v54 = vmul.f32 %v671_v52, %v664_v44  ;;  %v677_v55 = vrot.slane %v671_v52, %v1147_v58 }
 0x509   :  { %v673_v56 = vsub.f32 %v580_v53, %v672_v54  ;;  %v678_v57 = vmul.f32 %v677_v55, %v647_v29 }
 0x50b   :  { %v682_v59 = vrot.slane %v673_v56, %v1147_v58 }
 0x50d   :  { %v683_v60 = vadd.f32 %v682_v59, %v678_v57 }
 0x50f   :  { %974 = vtanh.f32 %v683_v60 }
 0x51c   :  { %v975_v61 = vpop.eup %974 }
 0x51d   :  { %v685_v62 = vmul.f32 0.99, %v975_v61 }
 0x51f   :  { %v686_v63 = vadd.f32 1.0, %v685_v62 }
 0x521   :  { %688 = vst.msk [vmem:[%s1216_s4] sm:$0xff] %vm687_vm1, %v686_v63 }
 0x522   :  { %693 = vsyncpa [#allocation3], 1 }
 0x523   :  { %694 = vsyncpa [#allocation5], 1 }
 0x524   :  { %695 = vsyncpa [#allocation8], 1 }

</bundles_post_ra>
